<compile_context>
chip_gen: v7x
topology: tpu7x:2x2x1
jax: 0.10.0
libtpu: 0.0.40
codegen_flags: <defaults>
</compile_context>

<pallas_src>
import functools

import jax
import jax.numpy as jnp
import numpy as np
from jax.experimental import pallas as pl
from jax.experimental.pallas import tpu as pltpu

# Conservative VMEM working-set cap with headroom on every generation
# (v5e/v6e: 128 MiB physical, v7x: 64 MiB physical / 32 MiB scoped default).
_VMEM_BUDGET_BYTES = 24 * 1024 * 1024
_VMEM_LIMIT_BYTES = 32 * 1024 * 1024
_MAX_ROW_TILE = 2048


def _round_up(x, m):
    return ((x + m - 1) // m) * m


# ---------------------------------------------------------------------------
# Kernels
# ---------------------------------------------------------------------------
def _psp_resident_kernel(x_ref, m_ref, s_ref, o_ref):
    """Pool mask fully resident in VMEM; one dot per row tile."""
    acc = jnp.dot(
        x_ref[...].astype(jnp.bfloat16),      # cast hidden under tile DMA
        m_ref[...],
        preferred_element_type=jnp.float32,
    )
    o_ref[...] = (acc * s_ref[...]).astype(o_ref.dtype)


def _psp_tiled_kernel(x_ref, m_ref, s_ref, o_ref, acc_ref, *, dhw, tk):
    """K-tiled variant with a resident f32 accumulator."""
    k = pl.program_id(1)

    @pl.when(k == 0)
    def _():
        acc_ref[...] = jnp.zeros_like(acc_ref)

    x = x_ref[...]
    if dhw % tk != 0:
        # Ragged last K tile: zero out garbage columns (pool-matrix pad rows
        # are exact zeros, so the padded region contributes exactly 0).
        col = jax.lax.broadcasted_iota(jnp.int32, x.shape, 1) + k * tk
        x = jnp.where(col < dhw, x, jnp.zeros_like(x))

    acc_ref[...] += jnp.dot(
        x.astype(jnp.bfloat16), m_ref[...], preferred_element_type=jnp.float32
    )

    @pl.when(k == pl.num_programs(1) - 1)
    def _():
        o_ref[...] = (acc_ref[...] * s_ref[...]).astype(o_ref.dtype)


# ---------------------------------------------------------------------------
# Tile planning
# ---------------------------------------------------------------------------
def _clamp_row_tile(bc, cap):
    tm = int(min(_MAX_ROW_TILE, cap, _round_up(bc, 8)))
    # Give both TensorCores work (v7x megacore) when there are enough rows.
    if bc >= 16 and tm >= bc:
        tm = _round_up((bc + 1) // 2, 8)
    tm = max(8, (tm // 8) * 8)
    return tm


def _plan_tiles(bc, dhw, tot_pad, *, force_tiled=False, max_tk=None,
                budget=_VMEM_BUDGET_BYTES):
    """Returns ("resident", tm, None) or ("tiled", tm, tk)."""
    scale_bytes = tot_pad * 4 * 2

    # --- Path A: pool mask fully resident, K collapsed ----------------------
    if not force_tiled:
        pool_bytes = dhw * tot_pad * 2 * 2            # bf16 mask, 2x safety
        per_row = (dhw + tot_pad) * 4 * 2             # f32 x + f32 out, double-buffered
        avail = budget - pool_bytes - scale_bytes
        if avail >= per_row * 8:
            return "resident", _clamp_row_tile(bc, avail // per_row), None

    # --- Path B: K-tiled with a resident f32 accumulator --------------------
    k_tiles = [t for t in (2048, 1024, 512, 256, 128)
               if max_tk is None or t <= max_tk]
    for idx, tk in enumerate(k_tiles):
        last = idx == len(k_tiles) - 1
        if tk > _round_up(dhw, 128) and not last:
            continue
        pool_bytes = tk * tot_pad * 2 * 2
        per_row = tk * 4 * 2 + tot_pad * 4 * 2 + tot_pad * 4
        avail = budget - pool_bytes - scale_bytes
        if avail >= per_row * 8 and (avail // per_row >= 256 or last):
            return "tiled", _clamp_row_tile(bc, avail // per_row), tk
    raise ValueError("No feasible PSP tiling within the VMEM budget.")


# ---------------------------------------------------------------------------
# Host-side pool constants: 0/1 membership mask (bf16-exact) + f32 1/count.
# PyTorch adaptive-pool bins: start = floor(i*n/s), end = ceil((i+1)*n/s).
# ---------------------------------------------------------------------------
def _adaptive_pool_1d_mask(n, s):
    i = np.arange(s)
    starts = (i * n) // s
    ends = -((-(i + 1) * n) // s)
    j = np.arange(n)
    return ((j[None, :] >= starts[:, None]) &
            (j[None, :] < ends[:, None])).astype(np.float32)      # (s, n)


def _build_pool_constants(d, h, w, sizes, dhw_rows, tot_pad):
    blocks, counts = [], []
    for s in sizes:
        md = _adaptive_pool_1d_mask(d, s)
        mh = _adaptive_pool_1d_mask(h, s)
        mw = _adaptive_pool_1d_mask(w, s)
        m = np.einsum("id,jh,kw->ijkdhw", md, mh, mw).reshape(s ** 3, d * h * w)
        blocks.append(m.T)                      # (DHW, s^3), 0/1 entries
        counts.append(m.sum(axis=1))            # bin volumes
    mask = np.concatenate(blocks, axis=1)       # (DHW, TOT)
    cnt = np.concatenate(counts)                # (TOT,)
    mask_pad = np.zeros((dhw_rows, tot_pad), np.float32)
    mask_pad[: mask.shape[0], : mask.shape[1]] = mask
    scale = np.zeros((1, tot_pad), np.float32)
    scale[0, : cnt.shape[0]] = 1.0 / cnt
    return (jnp.asarray(mask_pad, dtype=jnp.bfloat16),
            jnp.asarray(scale, dtype=jnp.float32))


# ---------------------------------------------------------------------------
# Jitted forward passes
# ---------------------------------------------------------------------------
@functools.partial(jax.jit, static_argnames=("tm", "tot"))
def _psp_forward_resident(feats, mask, scale, *, tm, tot):
    b, c, d, h, w = feats.shape
    bc, dhw = b * c, d * h * w
    tot_pad = mask.shape[1]
    x = feats.reshape(bc, dhw)                   # no cast / pad copies

    flops = 2 * bc * dhw * tot_pad
    bytes_accessed = bc * dhw * 4 + dhw * tot_pad * 2 + bc * tot_pad * 4

    out = pl.pallas_call(
        _psp_resident_kernel,
        out_shape=jax.ShapeDtypeStruct((bc, tot_pad), jnp.float32),
        grid_spec=pltpu.PrefetchScalarGridSpec(
            num_scalar_prefetch=0,
            grid=(pl.cdiv(bc, tm),),
            in_specs=[
                pl.BlockSpec((tm, dhw), lambda i: (i, 0)),
                pl.BlockSpec((dhw, tot_pad), lambda i: (0, 0)),   # resident
                pl.BlockSpec((1, tot_pad), lambda i: (0, 0)),     # resident
            ],
            out_specs=pl.BlockSpec((tm, tot_pad), lambda i: (i, 0)),
        ),
        compiler_params=pltpu.CompilerParams(
            dimension_semantics=("parallel",),
            vmem_limit_bytes=_VMEM_LIMIT_BYTES,
        ),
        cost_estimate=pl.CostEstimate(
            flops=flops, transcendentals=0, bytes_accessed=bytes_accessed),
    )(x, mask, scale)

    return out[:, :tot].reshape(b, c, tot)


@functools.partial(jax.jit, static_argnames=("tm", "tk", "tot"))
def _psp_forward_tiled(feats, mask, scale, *, tm, tk, tot):
    b, c, d, h, w = feats.shape
    bc, dhw = b * c, d * h * w
    dhw_rows, tot_pad = mask.shape               # dhw_rows = round_up(dhw, tk)
    x = feats.reshape(bc, dhw)

    n_rows = pl.cdiv(bc, tm)
    n_k = dhw_rows // tk
    flops = 2 * bc * dhw * tot_pad
    bytes_accessed = (bc * dhw * 4
                      + n_rows * dhw_rows * tot_pad * 2
                      + bc * tot_pad * 4)

    kernel = functools.partial(_psp_tiled_kernel, dhw=dhw, tk=tk)
    out = pl.pallas_call(
        kernel,
        out_shape=jax.ShapeDtypeStruct((bc, tot_pad), jnp.float32),
        grid_spec=pltpu.PrefetchScalarGridSpec(
            num_scalar_prefetch=0,
            grid=(n_rows, n_k),
            in_specs=[
                pl.BlockSpec((tm, tk), lambda i, k: (i, k)),
                pl.BlockSpec((tk, tot_pad), lambda i, k: (k, 0)),
                pl.BlockSpec((1, tot_pad), lambda i, k: (0, 0)),
            ],
            out_specs=pl.BlockSpec((tm, tot_pad), lambda i, k: (i, 0)),
            scratch_shapes=[pltpu.VMEM((tm, tot_pad), jnp.float32)],
        ),
        compiler_params=pltpu.CompilerParams(
            dimension_semantics=("parallel", "arbitrary"),
            vmem_limit_bytes=_VMEM_LIMIT_BYTES,
        ),
        cost_estimate=pl.CostEstimate(
            flops=flops, transcendentals=0, bytes_accessed=bytes_accessed),
    )(x, mask, scale)

    return out[:, :tot].reshape(b, c, tot)


# ---------------------------------------------------------------------------
# Module
# ---------------------------------------------------------------------------
class PSPModulePallas:
    """JAX/Pallas equivalent of the PyTorch PSPModule (dimension=3)."""

    def __init__(self, sizes, dimension=3, *, _force_tiled=False, _max_k_tile=None):
        assert dimension == 3, "This kernel implements the 3-D variant."
        self.sizes = tuple(int(s) for s in sizes)
        self.tot = sum(s ** 3 for s in self.sizes)
        self.tot_pad = max(128, _round_up(self.tot, 128))   # lane-dense output
        self._force_tiled = _force_tiled
        self._max_k_tile = _max_k_tile
        # Instance-level cache (device arrays freed with the module, not pinned
        # globally like a functools.lru_cache would).
        self._pool_cache = {}

    def _pool_constants(self, d, h, w, dhw_rows):
        key = (d, h, w, dhw_rows)
        if key not in self._pool_cache:
            self._pool_cache[key] = _build_pool_constants(
                d, h, w, self.sizes, dhw_rows, self.tot_pad)
        return self._pool_cache[key]

    def __call__(self, feats):
        b, c, d, h, w = feats.shape
        bc, dhw = b * c, d * h * w
        path, tm, tk = _plan_tiles(
            bc, dhw, self.tot_pad,
            force_tiled=self._force_tiled, max_tk=self._max_k_tile)
        if path == "resident":
            mask, scale = self._pool_constants(d, h, w, dhw)
            return _psp_forward_resident(feats, mask, scale, tm=tm, tot=self.tot)
        dhw_rows = _round_up(dhw, tk)
        mask, scale = self._pool_constants(d, h, w, dhw_rows)
        return _psp_forward_tiled(feats, mask, scale, tm=tm, tk=tk, tot=self.tot)


# ---------------------------------------------------------------------------
# NumPy reference (independent loop over bins) for correctness checks.
# ---------------------------------------------------------------------------
def _reference(feats, sizes):
    b, c, d, h, w = feats.shape
    x = np.asarray(feats)
    outs = []
    for s in sizes:
        out = np.zeros((b, c, s, s, s), dtype=np.float32)
        for i in range(s):
            d0, d1 = (i * d) // s, -((-(i + 1) * d) // s)
            for j in range(s):
                h0, h1 = (j * h) // s, -((-(j + 1) * h) // s)
                for k in range(s):
                    w0, w1 = (k * w) // s, -((-(k + 1) * w) // s)
                    out[:, :, i, j, k] = x[:, :, d0:d1, h0:h1, w0:w1].mean(
                        axis=(2, 3, 4))
        outs.append(out.reshape(b, c, -1))
    return np.concatenate(outs, axis=-1)


if __name__ == "__main__":
    sizes = (1, 2, 3, 6)
    expected_cols = sum(s ** 3 for s in sizes)

    # Test 1: resident-pool-matrix path (default planning).
    b, c, d, h, w = 2, 4, 8, 8, 8
    feats = jax.random.normal(jax.random.PRNGKey(0), (b, c, d, h, w),
                              dtype=jnp.float32)
    module = PSPModulePallas(sizes, dimension=3)
    center = jax.block_until_ready(module(feats))
    assert center.shape == (b, c, expected_cols), center.shape
    np.testing.assert_allclose(np.asarray(center), _reference(feats, sizes),
                               rtol=1e-2, atol=1e-2)

    # Test 2: K-tiled path with a ragged last K tile and a partial row tile.
    b2, c2, d2, h2, w2 = 1, 5, 7, 6, 5
    feats2 = jax.random.normal(jax.random.PRNGKey(1), (b2, c2, d2, h2, w2),
                               dtype=jnp.float32)
    module_tiled = PSPModulePallas(sizes, dimension=3,
                                   _force_tiled=True, _max_k_tile=128)
    center2 = jax.block_until_ready(module_tiled(feats2))
    assert center2.shape == (b2, c2, expected_cols), center2.shape
    np.testing.assert_allclose(np.asarray(center2), _reference(feats2, sizes),
                               rtol=1e-2, atol=1e-2)

    print("KERNEL_OK")
</pallas_src>

<mosaic_0001>
module attributes {stable_mosaic.version = 11 : i64} {
  func.func @_psp_resident_kernel(%arg0: i32, %arg1: memref<8x512xf32, #tpu.memory_space<vmem>>, %arg2: memref<512x256xbf16, #tpu.memory_space<vmem>>, %arg3: memref<1x256xf32, #tpu.memory_space<vmem>>, %arg4: memref<8x256xf32, #tpu.memory_space<vmem>>) attributes {dimension_semantics = [#tpu.dimension_semantics<parallel>], iteration_bounds = array<i64: 1>, scalar_prefetch = 0 : i64, scratch_operands = 0 : i64, tpu.core_type = #tpu.core_type<tc>, window_params = [{transform_indices = @transform_0, window_bounds = array<i64: 8, 512>}, {pipeline_mode = #tpu.pipeline_mode<synchronous>, transform_indices = @transform_1, window_bounds = array<i64: 512, 256>}, {pipeline_mode = #tpu.pipeline_mode<synchronous>, transform_indices = @transform_2, window_bounds = array<i64: 1, 256>}, {transform_indices = @transform_3, window_bounds = array<i64: 8, 256>}]} {
    %c0 = arith.constant 0 : index
    %c0_0 = arith.constant 0 : index
    %0 = vector.load %arg1[%c0, %c0_0] : memref<8x512xf32, #tpu.memory_space<vmem>>, vector<8x512xf32>
    %1 = arith.truncf %0 : vector<8x512xf32> to vector<8x512xbf16>
    %c0_1 = arith.constant 0 : index
    %c0_2 = arith.constant 0 : index
    %2 = vector.load %arg2[%c0_1, %c0_2] : memref<512x256xbf16, #tpu.memory_space<vmem>>, vector<512x256xbf16>
    %cst = arith.constant dense<0.000000e+00> : vector<8x256xf32>
    %3 = tpu.matmul %1, %2, %cst {dimension_numbers = #tpu.dot_dimension_numbers<[1], [0], [0], [1], [0, 0, 1, 1], [], []>} : vector<8x512xbf16>, vector<512x256xbf16>, vector<8x256xf32> -> vector<8x256xf32>
    %c0_3 = arith.constant 0 : index
    %c0_4 = arith.constant 0 : index
    %4 = vector.load %arg3[%c0_3, %c0_4] : memref<1x256xf32, #tpu.memory_space<vmem>>, vector<1x256xf32>
    %5 = vector.broadcast %4 : vector<1x256xf32> to vector<8x256xf32>
    %6 = arith.mulf %3, %5 : vector<8x256xf32>
    %c0_5 = arith.constant 0 : index
    %c0_6 = arith.constant 0 : index
    %7 = vector.load %arg4[%c0_5, %c0_6] : memref<8x256xf32, #tpu.memory_space<vmem>>, vector<8x256xf32>
    tpu.vector_store %arg4[%c0_5, %c0_6], %6 {strides = array<i32>} : memref<8x256xf32, #tpu.memory_space<vmem>>, vector<8x256xf32>,
    return
  }
  func.func @transform_0(%arg0: i32) -> (i32, i32) {
    %c0_i32 = arith.constant 0 : i32
    %c0_i32_0 = arith.constant 0 : i32
    return %arg0, %c0_i32 : i32, i32
  }
  func.func @transform_1(%arg0: i32) -> (i32, i32) {
    %c0_i32 = arith.constant 0 : i32
    %c0_i32_0 = arith.constant 0 : i32
    %c0_i32_1 = arith.constant 0 : i32
    return %c0_i32, %c0_i32_0 : i32, i32
  }
  func.func @transform_2(%arg0: i32) -> (i32, i32) {
    %c0_i32 = arith.constant 0 : i32
    %c0_i32_0 = arith.constant 0 : i32
    %c0_i32_1 = arith.constant 0 : i32
    return %c0_i32, %c0_i32_0 : i32, i32
  }
  func.func @transform_3(%arg0: i32) -> (i32, i32) {
    %c0_i32 = arith.constant 0 : i32
    %c0_i32_0 = arith.constant 0 : i32
    return %arg0, %c0_i32 : i32, i32
  }
}

</mosaic_0001>

<bundles_post_ra>
// kernel: _psp_forward_resident.1
= control target key start
LH: loop header
LB: loop body
LE: loop exit
PB: predicated region body
PF: predicated region fallthrough
CT: control target
= control target key end

     0   :  { %s903_s1 = inlined_call_operand.vmem [shape: bf16[512,256], index: 1, kind: input, shape index: {}]   ;;  %s904_s0 = inlined_call_operand.vmem [shape: f32[8,512], index: 0, kind: input, shape index: {}]   ;;  %s905_s2 = inlined_call_operand.vmem [shape: f32[1,256], index: 2, kind: input, shape index: {}]   ;;  %s906_s3 = inlined_call_operand.vmem [shape: f32[8,256], index: 3, kind: output, shape index: {}]  }
   0x1   :  { %v574_v0 = vld [vmem:[%s903_s1 + $0x4] ss:$8 sps:$4 sm:$0xff]   ;;  %v578_v2 = vld [vmem:[%s903_s1] ss:$8 sps:$4 sm:$0xff]   ;;  %v580_v4 = vld [vmem:[%s903_s1 + $0x14] ss:$8 sps:$4 sm:$0xff]  }
   0x2   :  { %v576_v1 = vld [vmem:[%s903_s1 + $0x104] ss:$8 sps:$4 sm:$0xff]   ;;  %406 = vmatprep.subr.bf16.mxu1 %v574_v0  ;;  %v579_v3 = vld [vmem:[%s903_s1 + $0x100] ss:$8 sps:$4 sm:$0xff]   ;;  %v582_v5 = vld [vmem:[%s903_s1 + $0x114] ss:$8 sps:$4 sm:$0xff]  }
   0x3   :  { %447 = vmatprep.subr.bf16.mxu0 %v576_v1  ;;  %407 = vmatpush1.bf16.msra.mxu1 %v578_v2  ;;  %v584_v6 = vld [vmem:[%s903_s1 + $0x10] ss:$8 sps:$4 sm:$0xff]   ;;  %v586_v8 = vld [vmem:[%s903_s1 + $0x24] ss:$8 sps:$4 sm:$0xff]   ;;  %v590_v10 = vld [vmem:[%s903_s1 + $0x20] ss:$8 sps:$4 sm:$0xff]  }
   0x4   :  { %448 = vmatpush1.bf16.msra.mxu0 %v579_v3  ;;  %408 = vmatprep.subr.bf16.mxu1 %v580_v4  ;;  %v585_v7 = vld [vmem:[%s903_s1 + $0x110] ss:$8 sps:$4 sm:$0xff]   ;;  %v588_v9 = vld [vmem:[%s903_s1 + $0x124] ss:$8 sps:$4 sm:$0xff]   ;;  %v591_v11 = vld [vmem:[%s903_s1 + $0x120] ss:$8 sps:$4 sm:$0xff]  }
   0x5   :  { %449 = vmatprep.subr.bf16.mxu0 %v582_v5  ;;  %v592_v12 = vld [vmem:[%s903_s1 + $0x34] ss:$8 sps:$4 sm:$0xff]   ;;  %v596_v14 = vld [vmem:[%s903_s1 + $0x30] ss:$8 sps:$4 sm:$0xff]   ;;  %v598_v16 = vld [vmem:[%s903_s1 + $0x44] ss:$8 sps:$4 sm:$0xff]  }
   0x6   :  { %v594_v13 = vld [vmem:[%s903_s1 + $0x134] ss:$8 sps:$4 sm:$0xff]   ;;  %v597_v15 = vld [vmem:[%s903_s1 + $0x130] ss:$8 sps:$4 sm:$0xff]   ;;  %v600_v17 = vld [vmem:[%s903_s1 + $0x144] ss:$8 sps:$4 sm:$0xff]  }
   0x7   :  { %409 = vmatpush1.bf16.msra.mxu1 %v584_v6  ;;  %v602_v18 = vld [vmem:[%s903_s1 + $0x40] ss:$8 sps:$4 sm:$0xff]   ;;  %v604_v20 = vld [vmem:[%s903_s1 + $0x54] ss:$8 sps:$4 sm:$0xff]   ;;  %v608_v22 = vld [vmem:[%s903_s1 + $0x50] ss:$8 sps:$4 sm:$0xff]  }
   0x8   :  { %450 = vmatpush1.bf16.msra.mxu0 %v585_v7  ;;  %410 = vmatprep.subr.bf16.mxu1 %v586_v8  ;;  %v603_v19 = vld [vmem:[%s903_s1 + $0x140] ss:$8 sps:$4 sm:$0xff]   ;;  %v606_v21 = vld [vmem:[%s903_s1 + $0x154] ss:$8 sps:$4 sm:$0xff]   ;;  %v609_v23 = vld [vmem:[%s903_s1 + $0x150] ss:$8 sps:$4 sm:$0xff]   ;;  %v490_v8 = vlaneseq }
   0x9   :  { %451 = vmatprep.subr.bf16.mxu0 %v588_v9  ;;  %v610_v24 = vld [vmem:[%s903_s1 + $0x64] ss:$8 sps:$4 sm:$0xff]   ;;  %v614_v26 = vld [vmem:[%s903_s1 + $0x60] ss:$8 sps:$4 sm:$0xff]   ;;  %v616_v28 = vld [vmem:[%s903_s1 + $0x74] ss:$8 sps:$4 sm:$0xff]  }
   0xa   :  { %v612_v25 = vld [vmem:[%s903_s1 + $0x164] ss:$8 sps:$4 sm:$0xff]   ;;  %v615_v27 = vld [vmem:[%s903_s1 + $0x160] ss:$8 sps:$4 sm:$0xff]   ;;  %v618_v29 = vld [vmem:[%s903_s1 + $0x174] ss:$8 sps:$4 sm:$0xff]  }
   0xb   :  { %411 = vmatpush1.bf16.msra.mxu1 %v590_v10  ;;  %v620_v30 = vld [vmem:[%s903_s1 + $0x70] ss:$8 sps:$4 sm:$0xff]   ;;  %v622_v32 = vld [vmem:[%s903_s1 + $0x84] ss:$8 sps:$4 sm:$0xff]   ;;  %v626_v34 = vld [vmem:[%s903_s1 + $0x80] ss:$8 sps:$4 sm:$0xff]  }
   0xc   :  { %452 = vmatpush1.bf16.msra.mxu0 %v591_v11  ;;  %412 = vmatprep.subr.bf16.mxu1 %v592_v12  ;;  %v621_v31 = vld [vmem:[%s903_s1 + $0x170] ss:$8 sps:$4 sm:$0xff]   ;;  %v624_v33 = vld [vmem:[%s903_s1 + $0x184] ss:$8 sps:$4 sm:$0xff]   ;;  %v627_v35 = vld [vmem:[%s903_s1 + $0x180] ss:$8 sps:$4 sm:$0xff]  }
   0xd   :  { %453 = vmatprep.subr.bf16.mxu0 %v594_v13  ;;  %v628_v36 = vld [vmem:[%s903_s1 + $0x94] ss:$8 sps:$4 sm:$0xff]   ;;  %v632_v38 = vld [vmem:[%s903_s1 + $0x90] ss:$8 sps:$4 sm:$0xff]   ;;  %v634_v40 = vld [vmem:[%s903_s1 + $0xa4] ss:$8 sps:$4 sm:$0xff]  }
   0xe   :  { %v630_v37 = vld [vmem:[%s903_s1 + $0x194] ss:$8 sps:$4 sm:$0xff]   ;;  %v633_v39 = vld [vmem:[%s903_s1 + $0x190] ss:$8 sps:$4 sm:$0xff]   ;;  %v636_v41 = vld [vmem:[%s903_s1 + $0x1a4] ss:$8 sps:$4 sm:$0xff]  }
   0xf   :  { %413 = vmatpush1.bf16.msra.mxu1 %v596_v14  ;;  %v638_v42 = vld [vmem:[%s903_s1 + $0xa0] ss:$8 sps:$4 sm:$0xff]   ;;  %v640_v44 = vld [vmem:[%s903_s1 + $0xb4] ss:$8 sps:$4 sm:$0xff]   ;;  %v644_v49 = vld [vmem:[%s903_s1 + $0xb0] ss:$8 sps:$4 sm:$0xff]  }
  0x10   :  { %454 = vmatpush1.bf16.msra.mxu0 %v597_v15  ;;  %414 = vmatprep.subr.bf16.mxu1 %v598_v16  ;;  %v639_v43 = vld [vmem:[%s903_s1 + $0x1a0] ss:$8 sps:$4 sm:$0xff]   ;;  %v642_v45 = vld [vmem:[%s903_s1 + $0x1b4] ss:$8 sps:$4 sm:$0xff]   ;;  %v645_v50 = vld [vmem:[%s903_s1 + $0x1b0] ss:$8 sps:$4 sm:$0xff]  }
  0x11   :  { %455 = vmatprep.subr.bf16.mxu0 %v600_v17  ;;  %v15_v46 = vld [vmem:[%s904_s0 + $0x8] sm:$0xff]  ;;  %v17_v48 = vld [vmem:[%s904_s0 + $0x18] sm:$0xff]  ;;  %v14_v4 = vld [vmem:[%s904_s0] sm:$0xff]  ;;  %v491_v9 = vshrl.u32 %v490_v8, 7 }
  0x12   :  { %v19_v47 = vpack.c.bf16 %v15_v46, %v15_v46  ;;  %v21_v51 = vpack.c.bf16 %v17_v48, %v17_v48  ;;  %v646_v52 = vld [vmem:[%s903_s1 + $0xc4] ss:$8 sps:$4 sm:$0xff]   ;;  %v650_v54 = vld [vmem:[%s903_s1 + $0xc0] ss:$8 sps:$4 sm:$0xff]   ;;  %v652_v56 = vld [vmem:[%s903_s1 + $0xd4] ss:$8 sps:$4 sm:$0xff]   ;;  %v18_v6 = vpack.c.bf16 %v14_v4, %v14_v4 }
  0x13   :  { %415 = vmatpush1.bf16.msra.mxu1 %v602_v18  ;;  %v648_v53 = vld [vmem:[%s903_s1 + $0x1c4] ss:$8 sps:$4 sm:$0xff]   ;;  %v651_v55 = vld [vmem:[%s903_s1 + $0x1c0] ss:$8 sps:$4 sm:$0xff]   ;;  %v654_v57 = vld [vmem:[%s903_s1 + $0x1d4] ss:$8 sps:$4 sm:$0xff]  }
  0x14   :  { %456 = vmatpush1.bf16.msra.mxu0 %v603_v19  ;;  %416 = vmatprep.subr.bf16.mxu1 %v604_v20  ;;  %v656_v58 = vld [vmem:[%s903_s1 + $0xd0] ss:$8 sps:$4 sm:$0xff]   ;;  %v658_v60 = vld [vmem:[%s903_s1 + $0xe4] ss:$8 sps:$4 sm:$0xff]   ;;  %v662_v62 = vld [vmem:[%s903_s1 + $0xe0] ss:$8 sps:$4 sm:$0xff]  }
  0x15   :  { %457 = vmatprep.subr.bf16.mxu0 %v606_v21  ;;  %438 = vmatprep.mubr.bf16.mxu1 %v19_v47  ;;  %v657_v59 = vld [vmem:[%s903_s1 + $0x1d0] ss:$8 sps:$4 sm:$0xff]   ;;  %v660_v61 = vld [vmem:[%s903_s1 + $0x1e4] ss:$8 sps:$4 sm:$0xff]   ;;  %v663_v63 = vld [vmem:[%s903_s1 + $0x1e0] ss:$8 sps:$4 sm:$0xff]  }
  0x16   :  { %479 = vmatprep.mubr.bf16.mxu0 %v21_v51  ;;  %v664_v0 = vld [vmem:[%s903_s1 + $0xf4] ss:$8 sps:$4 sm:$0xff]   ;;  %v668_v2 = vld [vmem:[%s903_s1 + $0xf0] ss:$8 sps:$4 sm:$0xff]   ;;  %v492_v10 = vsub.s32 0, %v491_v9  ;;  %v496_v12 = vsub.s32 1, %v491_v9 }
  0x17   :  { %417 = vmatpush1.bf16.msra.mxu1 %v608_v22  ;;  %v666_v1 = vld [vmem:[%s903_s1 + $0x1f4] ss:$8 sps:$4 sm:$0xff]   ;;  %v669_v3 = vld [vmem:[%s903_s1 + $0x1f0] ss:$8 sps:$4 sm:$0xff]   ;;  %v488_v11 = vld [vmem:[%s905_s2] sm:$0x3] }
  0x18   :  { %458 = vmatpush1.bf16.msra.mxu0 %v609_v23  ;;  %418 = vmatprep.subr.bf16.mxu1 %v610_v24  ;;  %v16_v5 = vld [vmem:[%s904_s0 + $0x10] sm:$0xff]  ;;  %v493_v13 = vrot.slane %v488_v11, %v492_v10  ;;  %v497_v16 = vrot.slane %v488_v11, %v496_v12 }
  0x19   :  { %459 = vmatprep.subr.bf16.mxu0 %v612_v25  ;;  %v20_v7 = vpack.c.bf16 %v16_v5, %v16_v5 }
  0x1b   :  { %419 = vmatpush1.bf16.msra.mxu1 %v614_v26 }
  0x1c   :  { %460 = vmatpush1.bf16.msra.mxu0 %v615_v27  ;;  %420 = vmatprep.subr.bf16.mxu1 %v616_v28 }
  0x1d   :  { %461 = vmatprep.subr.bf16.mxu0 %v618_v29 }
  0x1f   :  { %421 = vmatpush1.bf16.msra.mxu1 %v620_v30 }
  0x20   :  { %462 = vmatpush1.bf16.msra.mxu0 %v621_v31  ;;  %422 = vmatprep.subr.bf16.mxu1 %v622_v32 }
  0x21   :  { %463 = vmatprep.subr.bf16.mxu0 %v624_v33 }
  0x23   :  { %423 = vmatpush1.bf16.msra.mxu1 %v626_v34 }
  0x24   :  { %464 = vmatpush1.bf16.msra.mxu0 %v627_v35  ;;  %424 = vmatprep.subr.bf16.mxu1 %v628_v36 }
  0x25   :  { %465 = vmatprep.subr.bf16.mxu0 %v630_v37 }
  0x27   :  { %425 = vmatpush1.bf16.msra.mxu1 %v632_v38 }
  0x28   :  { %466 = vmatpush1.bf16.msra.mxu0 %v633_v39  ;;  %426 = vmatprep.subr.bf16.mxu1 %v634_v40 }
  0x29   :  { %467 = vmatprep.subr.bf16.mxu0 %v636_v41 }
  0x2b   :  { %427 = vmatpush1.bf16.msra.mxu1 %v638_v42 }
  0x2c   :  { %468 = vmatpush1.bf16.msra.mxu0 %v639_v43  ;;  %428 = vmatprep.subr.bf16.mxu1 %v640_v44 }
  0x2d   :  { %469 = vmatprep.subr.bf16.mxu0 %v642_v45 }
  0x2f   :  { %429 = vmatpush1.bf16.msra.mxu1 %v644_v49 }
  0x30   :  { %470 = vmatpush1.bf16.msra.mxu0 %v645_v50  ;;  %430 = vmatprep.subr.bf16.mxu1 %v646_v52 }
  0x31   :  { %471 = vmatprep.subr.bf16.mxu0 %v648_v53 }
  0x33   :  { %431 = vmatpush1.bf16.msra.mxu1 %v650_v54 }
  0x34   :  { %472 = vmatpush1.bf16.msra.mxu0 %v651_v55  ;;  %432 = vmatprep.subr.bf16.mxu1 %v652_v56 }
  0x35   :  { %473 = vmatprep.subr.bf16.mxu0 %v654_v57 }
  0x37   :  { %433 = vmatpush1.bf16.msra.mxu1 %v656_v58 }
  0x38   :  { %474 = vmatpush1.bf16.msra.mxu0 %v657_v59  ;;  %434 = vmatprep.subr.bf16.mxu1 %v658_v60 }
  0x39   :  { %475 = vmatprep.subr.bf16.mxu0 %v660_v61 }
  0x3b   :  { %435 = vmatpush1.bf16.msra.mxu1 %v662_v62 }
  0x3c   :  { %476 = vmatpush1.bf16.msra.mxu0 %v663_v63  ;;  %436 = vmatprep.subr.bf16.mxu1 %v664_v0 }
  0x3d   :  { %477 = vmatprep.subr.bf16.mxu0 %v666_v1 }
  0x3f   :  { %437 = vmatpush1.bf16.msra.mxu1 %v668_v2 }
  0x40   :  { %478 = vmatpush1.bf16.msra.mxu0 %v669_v3 }
  0x42   :  { %439 = vmatmul.mubr.bf16.vlgmr.msra.gmra.mrb[0].mxu1 %v18_v6 }
  0x43   :  { %480 = vmatmul.mubr.bf16.vlgmr.msra.gmra.mrb[0].mxu0 %v20_v7 }
 0x115   :  { %v440_v14 = vpop.f32.mrb[0].mxu1 }
 0x116   :  { %v481_v15 = vpop.f32.mrb[0].mxu0  ;;  %v442_v18 = vpop.f32.mrb[1].mxu1 }
 0x117   :  { %v482_v17 = vadd.f32 %v481_v15, %v440_v14  ;;  %v483_v19 = vpop.f32.mrb[1].mxu0  ;;  %v444_v21 = vpop.f32.mrb[2].mxu1 }
 0x118   :  { %v484_v20 = vadd.f32 %v483_v19, %v442_v18  ;;  %v485_v22 = vpop.f32.mrb[2].mxu0  ;;  %v445_v24 = vpop.f32.mrb[3].mxu1 }
 0x119   :  { %v500_v23 = vmul.f32 %v493_v13, %v482_v17  ;;  %v486_v25 = vpop.f32.mrb[3].mxu0 }
 0x11a   :  { %v501_v26 = vmul.f32 %v497_v16, %v484_v20 }
 0x11b   :  { %502 = vst [vmem:[%s906_s3] sm:$0xff] %v500_v23 }
 0x11c   :  { %503 = vst [vmem:[%s906_s3 + $0x8] sm:$0xff] %v501_v26 }

</bundles_post_ra>
